<compile_context>
chip_gen: v5e
topology: v5e:2x2
jax: 0.10.0
libtpu: 0.0.40
codegen_flags: <defaults>
</compile_context>

<pallas_src>
import functools

import jax
import jax.numpy as jnp
from jax.experimental import pallas as pl
from jax.experimental.pallas import tpu as pltpu


def _attention_kernel(x_ref, w1s_ref, shift_ref, w2_ref, out_ref):
    """One (C, t_hw) spatial tile of one batch element.

    x_ref:     (C,  t_hw)  input pixels (channels x spatial), native dtype
    w1s_ref:   (Ch, C)     conv1 weight with BN scale folded in (Ch = C // 4)
    shift_ref: (Ch, 1)     folded BN shift = beta - mean * scale   (f32)
    w2_ref:    (Ch, 1)     conv2 weight (saliency head), column    (f32)
    out_ref:   (C,  t_hw)  attended features
    """
    x = x_ref[...]                                                   # (C, t_hw)
    # conv1 (1x1, no bias) with BN scale folded in -> MXU matmul, f32 accumulate.
    h = jnp.dot(w1s_ref[...], x, preferred_element_type=jnp.float32,
                precision=jax.lax.Precision.HIGHEST)                 # (Ch, t_hw)
    # BN additive part + ReLU (VPU).
    h = jnp.maximum(h + shift_ref[...], 0.0)
    # conv2 (C//4 -> 1): degenerate M=1/K=Ch matmul replaced by a VPU multiply
    # + cross-sublane (XLU) reduction so the MXU slot only runs the real matmul.
    s = jnp.sum(h * w2_ref[...], axis=0, keepdims=True)              # (1, t_hw)
    # Sigmoid attention map (EUP), broadcast multiply over channels.
    attn = jax.nn.sigmoid(s).astype(x.dtype)                         # (1, t_hw)
    out_ref[...] = (x * attn).astype(out_ref.dtype)


def _vmem_capacity_bytes():
    """Per-core VMEM capacity; conservative fallback if the query is unavailable."""
    try:
        return int(pltpu.get_tpu_info().vmem_capacity_bytes)
    except Exception:  # pragma: no cover - defensive
        return 64 << 20  # v7x per-TC physical VMEM (smallest of current parts)


def _pick_spatial_tile(hw, c, itemsize, max_block_bytes, batch, min_steps=8):
    """Pick a 128-multiple spatial tile that (a) fits the per-block byte budget
    and (b) leaves at least ~min_steps grid steps so both v7x TensorCores get
    work and the pipeline's first/last DMA is hidden.  If hw <= 128 the full
    extent is used (full-dim blocks are always legal)."""
    if hw <= 128:
        return hw
    # Largest 128-multiple tile within the byte budget (>= 128).
    max_elems = max(128, (max_block_bytes // (c * itemsize)) // 128 * 128)
    hw_pad = -(-hw // 128) * 128
    t = min(hw_pad, max_elems)
    # Clamp so B * ceil(HW / t) >= min_steps (shrink tile on small maps).
    want_tiles = -(-min_steps // batch)                       # ceil(min_steps/B)
    t_for_steps = max(128, (hw // want_tiles) // 128 * 128)
    return max(128, min(t, t_for_steps))


@functools.partial(jax.jit, static_argnames=("eps", "donate_x"))
def transformer_attention_e3_only(x_nchw, w1, bn_gamma, bn_beta, bn_mean,
                                  bn_var, w2, *, eps=1e-5, donate_x=False):
    """x_nchw: (B, C, H, W).  Returns (B, C, H, W) of the same dtype."""
    B, C, H, W = x_nchw.shape
    Ch = w1.shape[0]  # C // 4
    HW = H * W

    # ---- Fold BatchNorm (inference mode) into the conv1 weight + a shift. ----
    scale = (bn_gamma / jnp.sqrt(bn_var + eps)).astype(jnp.float32)   # (Ch,)
    w1_mat = w1.reshape(Ch, C).astype(jnp.float32)                    # (Ch, C)
    # bf16 fast path: MXU consumes a bf16 x tile natively, f32 accumulation.
    w1_dtype = x_nchw.dtype if x_nchw.dtype == jnp.bfloat16 else jnp.float32
    w1_scaled = (w1_mat * scale[:, None]).astype(w1_dtype)            # (Ch, C)
    shift = (bn_beta - bn_mean * scale).reshape(Ch, 1).astype(jnp.float32)
    w2_col = w2.reshape(Ch, 1).astype(jnp.float32)                    # (Ch, 1)

    # ---- Native layout: (B, C, H*W) -- pure reshape, no HBM transpose. ----
    x_flat = x_nchw.reshape(B, C, HW)
    itemsize = jnp.dtype(x_flat.dtype).itemsize

    # ---- Generation-aware sizing. ----
    vmem_cap = _vmem_capacity_bytes()
    # ~8 MiB blocks on 128 MiB parts (v5e/v6e), ~4 MiB on 64 MiB parts (v7x).
    max_block_bytes = max(1 << 20, vmem_cap // 16)
    t_hw = _pick_spatial_tile(HW, C, itemsize, max_block_bytes, B)
    n_tiles = pl.cdiv(HW, t_hw)
    block_bytes = C * t_hw * itemsize

    # VMEM budget: double-buffered in + out blocks, the (Ch, t_hw) ReLU
    # activation and the (1, t_hw) saliency/attn rows, weights, plus slack for
    # Mosaic internal scratch.  Cap at ~3/4 of physical VMEM.
    intermediate_bytes = (Ch + 2) * t_hw * 4
    weight_bytes = (Ch * C + 2 * Ch) * 4
    vmem_needed = 4 * block_bytes + intermediate_bytes + 2 * weight_bytes + (4 << 20)
    vmem_limit = int(min(max(vmem_needed, 16 << 20), vmem_cap * 3 // 4))

    grid = (B, n_tiles)

    cost = pl.CostEstimate(
        flops=int(2 * B * HW * (Ch * C + Ch) + B * HW * C),
        transcendentals=int(B * HW),
        bytes_accessed=int(2 * B * C * HW * itemsize),
    )

    out_flat = pl.pallas_call(
        _attention_kernel,
        out_shape=jax.ShapeDtypeStruct((B, C, HW), x_flat.dtype),
        grid_spec=pltpu.PrefetchScalarGridSpec(
            num_scalar_prefetch=0,
            grid=grid,
            in_specs=[
                pl.BlockSpec((None, C, t_hw), lambda b, j: (b, 0, j)),  # x tile
                pl.BlockSpec((Ch, C), lambda b, j: (0, 0)),             # w1*scale
                pl.BlockSpec((Ch, 1), lambda b, j: (0, 0)),             # bn shift
                pl.BlockSpec((Ch, 1), lambda b, j: (0, 0)),             # w2 column
            ],
            out_specs=pl.BlockSpec((None, C, t_hw), lambda b, j: (b, 0, j)),
        ),
        compiler_params=pltpu.CompilerParams(
            dimension_semantics=("parallel", "parallel"),
            vmem_limit_bytes=vmem_limit),
        cost_estimate=cost,
        # Donate x's HBM buffer when the caller no longer needs it.
        input_output_aliases=({0: 0} if donate_x else {}),
    )(x_flat, w1_scaled, shift, w2_col)

    return out_flat.reshape(B, C, H, W)


def _reference(x_nchw, w1, bn_gamma, bn_beta, bn_mean, bn_var, w2, eps=1e-5):
    """Pure-JAX reference of the PyTorch forward (eval-mode BN)."""
    B, C, H, W = x_nchw.shape
    Ch = w1.shape[0]
    xf = x_nchw.reshape(B, C, H * W)
    h = jnp.einsum("oc,bcp->bop", w1.reshape(Ch, C), xf, precision="highest")
    h = ((h - bn_mean[None, :, None]) / jnp.sqrt(bn_var[None, :, None] + eps)
         * bn_gamma[None, :, None] + bn_beta[None, :, None])
    h = jnp.maximum(h, 0.0)
    s = jnp.einsum("oc,bcp->bop", w2.reshape(1, Ch), h, precision="highest")
    attn = jax.nn.sigmoid(s)
    return (xf * attn).reshape(B, C, H, W)


if __name__ == "__main__":
    # Small deterministic example: B=2, C=32, H=W=16  (C//4 = 8 hidden channels).
    B, C, H, W = 2, 32, 16, 16
    Ch = C // 4

    key = jax.random.PRNGKey(0)
    k_x, k_w1, k_w2, k_g, k_b, k_m, k_v = jax.random.split(key, 7)

    x = jax.random.normal(k_x, (B, C, H, W), dtype=jnp.float32)
    # Conv2d weights: (out_channels, in_channels, 1, 1), no bias.
    w1 = jax.random.normal(k_w1, (Ch, C, 1, 1), dtype=jnp.float32) * 0.1
    w2 = jax.random.normal(k_w2, (1, Ch, 1, 1), dtype=jnp.float32) * 0.1
    # BatchNorm2d(C//4) parameters / running stats (deterministic, eval mode).
    bn_gamma = 1.0 + 0.1 * jax.random.normal(k_g, (Ch,), dtype=jnp.float32)
    bn_beta = 0.1 * jax.random.normal(k_b, (Ch,), dtype=jnp.float32)
    bn_mean = 0.1 * jax.random.normal(k_m, (Ch,), dtype=jnp.float32)
    bn_var = jnp.abs(1.0 + 0.1 * jax.random.normal(k_v, (Ch,), dtype=jnp.float32))

    out = transformer_attention_e3_only(x, w1, bn_gamma, bn_beta, bn_mean,
                                        bn_var, w2)
    out = jax.block_until_ready(out)

    ref = _reference(x, w1, bn_gamma, bn_beta, bn_mean, bn_var, w2)
    assert out.shape == (B, C, H, W)
    assert jnp.allclose(out, ref, atol=1e-5, rtol=1e-5), "mismatch vs reference"

    print("KERNEL_OK")
</pallas_src>

<mosaic_0001>
module attributes {stable_mosaic.version = 11 : i64} {
  func.func @_attention_kernel(%arg0: i32, %arg1: i32, %arg2: memref<1x32x128xf32, #tpu.memory_space<vmem>>, %arg3: memref<8x32xf32, #tpu.memory_space<vmem>>, %arg4: memref<8x1xf32, #tpu.memory_space<vmem>>, %arg5: memref<8x1xf32, #tpu.memory_space<vmem>>, %arg6: memref<1x32x128xf32, #tpu.memory_space<vmem>>) attributes {dimension_semantics = [#tpu.dimension_semantics<parallel>, #tpu.dimension_semantics<parallel>], iteration_bounds = array<i64: 2, 2>, scalar_prefetch = 0 : i64, scratch_operands = 0 : i64, tpu.core_type = #tpu.core_type<tc>, window_params = [{transform_indices = @transform_0, window_bounds = array<i64: 1, 32, 128>}, {pipeline_mode = #tpu.pipeline_mode<synchronous>, transform_indices = @transform_1, window_bounds = array<i64: 8, 32>}, {pipeline_mode = #tpu.pipeline_mode<synchronous>, transform_indices = @transform_2, window_bounds = array<i64: 8, 1>}, {pipeline_mode = #tpu.pipeline_mode<synchronous>, transform_indices = @transform_3, window_bounds = array<i64: 8, 1>}, {transform_indices = @transform_4, window_bounds = array<i64: 1, 32, 128>}]} {
    %c0 = arith.constant 0 : index
    %c0_0 = arith.constant 0 : index
    %c0_1 = arith.constant 0 : index
    %0 = vector.load %arg2[%c0, %c0_0, %c0_1] : memref<1x32x128xf32, #tpu.memory_space<vmem>>, vector<1x32x128xf32>
    %1 = vector.shape_cast %0 : vector<1x32x128xf32> to vector<32x128xf32>
    %c0_2 = arith.constant 0 : index
    %c0_3 = arith.constant 0 : index
    %2 = vector.load %arg3[%c0_2, %c0_3] : memref<8x32xf32, #tpu.memory_space<vmem>>, vector<8x32xf32>
    %cst = arith.constant dense<0.000000e+00> : vector<8x128xf32>
    %3 = tpu.matmul %2, %1, %cst {dimension_numbers = #tpu.dot_dimension_numbers<[1], [0], [0], [1], [0, 0, 1, 1], [], []>, precision = #tpu.contract_precision<fp32>} : vector<8x32xf32>, vector<32x128xf32>, vector<8x128xf32> -> vector<8x128xf32>
    %c0_4 = arith.constant 0 : index
    %c0_5 = arith.constant 0 : index
    %4 = vector.load %arg4[%c0_4, %c0_5] : memref<8x1xf32, #tpu.memory_space<vmem>>, vector<8x1xf32>
    %5 = vector.broadcast %4 : vector<8x1xf32> to vector<8x128xf32>
    %6 = arith.addf %3, %5 : vector<8x128xf32>
    %cst_6 = arith.constant 0.000000e+00 : f32
    %7 = vector.broadcast %cst_6 : f32 to vector<8x128xf32>
    %8 = arith.maximumf %6, %7 : vector<8x128xf32>
    %c0_7 = arith.constant 0 : index
    %c0_8 = arith.constant 0 : index
    %9 = vector.load %arg5[%c0_7, %c0_8] : memref<8x1xf32, #tpu.memory_space<vmem>>, vector<8x1xf32>
    %10 = vector.broadcast %9 : vector<8x1xf32> to vector<8x128xf32>
    %11 = arith.mulf %8, %10 : vector<8x128xf32>
    %cst_9 = arith.constant dense<0.000000e+00> : vector<128xf32>
    %12 = vector.multi_reduction <add>, %11, %cst_9 [0] : vector<8x128xf32> to vector<128xf32>
    %13 = vector.shape_cast %12 : vector<128xf32> to vector<1x128xf32>
    %14 = arith.negf %13 : vector<1x128xf32>
    %15 = math.exp %14 : vector<1x128xf32>
    %cst_10 = arith.constant 1.000000e+00 : f32
    %16 = vector.broadcast %cst_10 : f32 to vector<1x128xf32>
    %17 = arith.addf %16, %15 : vector<1x128xf32>
    %18 = arith.divf %16, %17 : vector<1x128xf32>
    %19 = vector.broadcast %18 : vector<1x128xf32> to vector<32x128xf32>
    %20 = arith.mulf %1, %19 : vector<32x128xf32>
    %c0_11 = arith.constant 0 : index
    %c0_12 = arith.constant 0 : index
    %c0_13 = arith.constant 0 : index
    %21 = vector.load %arg6[%c0_11, %c0_12, %c0_13] : memref<1x32x128xf32, #tpu.memory_space<vmem>>, vector<1x32x128xf32>
    %22 = vector.shape_cast %21 : vector<1x32x128xf32> to vector<32x128xf32>
    %23 = vector.shape_cast %20 : vector<32x128xf32> to vector<1x32x128xf32>
    tpu.vector_store %arg6[%c0_11, %c0_12, %c0_13], %23 {strides = array<i32>} : memref<1x32x128xf32, #tpu.memory_space<vmem>>, vector<1x32x128xf32>,
    return
  }
  func.func @transform_0(%arg0: i32, %arg1: i32) -> (i32, i32, i32) {
    %c0_i32 = arith.constant 0 : i32
    %c0_i32_0 = arith.constant 0 : i32
    return %arg0, %c0_i32, %arg1 : i32, i32, i32
  }
  func.func @transform_1(%arg0: i32, %arg1: i32) -> (i32, i32) {
    %c0_i32 = arith.constant 0 : i32
    %c0_i32_0 = arith.constant 0 : i32
    %c0_i32_1 = arith.constant 0 : i32
    return %c0_i32, %c0_i32_0 : i32, i32
  }
  func.func @transform_2(%arg0: i32, %arg1: i32) -> (i32, i32) {
    %c0_i32 = arith.constant 0 : i32
    %c0_i32_0 = arith.constant 0 : i32
    %c0_i32_1 = arith.constant 0 : i32
    return %c0_i32, %c0_i32_0 : i32, i32
  }
  func.func @transform_3(%arg0: i32, %arg1: i32) -> (i32, i32) {
    %c0_i32 = arith.constant 0 : i32
    %c0_i32_0 = arith.constant 0 : i32
    %c0_i32_1 = arith.constant 0 : i32
    return %c0_i32, %c0_i32_0 : i32, i32
  }
  func.func @transform_4(%arg0: i32, %arg1: i32) -> (i32, i32, i32) {
    %c0_i32 = arith.constant 0 : i32
    %c0_i32_0 = arith.constant 0 : i32
    return %arg0, %c0_i32, %arg1 : i32, i32, i32
  }
}

</mosaic_0001>

<bundles_post_ra>
// kernel: transformer_attention_e3_only.1
= control target key start
LH: loop header
LB: loop body
LE: loop exit
PB: predicated region body
PF: predicated region fallthrough
CT: control target
= control target key end

     0   :  { %s786_s15 = smov 0   ;;  %s788_s16 = smov 0   ;;  %s915_s0 = inlined_call_operand.vmem [shape: f32[2,32,256], index: 0, kind: input, shape index: {}]   ;;  %s916_s1 = inlined_call_operand.vmem [shape: f32[8,32], index: 1, kind: input, shape index: {}]   ;;  %s917_s2 = inlined_call_operand.vmem [shape: f32[8,1], index: 2, kind: input, shape index: {}]   ;;  %s918_s3 = inlined_call_operand.vmem [shape: f32[8,1], index: 3, kind: input, shape index: {}]   ;;  %s919_s4 = inlined_call_operand.vmem [shape: f32[2,32,256], index: 4, kind: output, shape index: {}]  }
   0x1   :  { %s790_s17 = smov 0   ;;  %s792_s18 = smov 0  }
   0x2   :  { %s794_s19 = smov 0   ;;  %s796_s20 = smov 0  }
   0x3   :  { %s798_s21 = smov 0  }
   0x4 LB: > { %s23_s22 = sadd.s32 1, %s750_s19  ;;  %s26_s23 = sadd.s32 1, %s754_s20  ;;  %s758_s21 = sphi %s798_s21, %s14_s21   ;;  %s754_s20 = sphi %s796_s20, %s926_s20   ;;  %s750_s19 = sphi %s794_s19, %s925_s19   ;;  %s746_s18 = sphi %s792_s18, %s924_s18   ;;  %s742_s17 = sphi %s790_s17, %s923_s17   ;;  %s738_s16 = sphi %s788_s16, %s922_s16   ;;  %s734_s15 = sphi %s786_s15, %s921_s15  }
   0x5   : > { %p24_p0 = scmp.ge.s32.totalorder %s23_s22, 2  ;;  %s626_s24 = sadd.s32 4294967295, %s758_s21  }
   0x6   : > { %p42_p1 = scmp.ne.s32.totalorder %s738_s16, %s734_s15  ;;  %p43_p2 = scmp.eq.s32.totalorder %s758_s21, 0 }
   0x7   : > { %s928_s22 = smov (%p24_p0, %s23_s22), 0  ;;  %s930_s23 = smov (!%p24_p0, %s26_s23), %s754_s20 }
   0x8   : > { %p28_p3 = scmp.ge.s32.totalorder %s930_s23, 2  ;;  %p137_p4 = scmp.eq.s32.totalorder %s626_s24, 3 }
   0x9   : > { %s31_s25 = ssub.s32 %s750_s19, %s928_s22  ;;  %p44_p5 = por %p43_p2, %p42_p1 }
   0xa   : > { %s932_s23 = smov (%p28_p3, %s930_s23), 0  ;;  %p834_p6 = por %p137_p4, %p42_p1 }
   0xb   : > { %s30_s27 = ssub.s32 %s754_s20, %s932_s23  ;;  %s35_s29 = sadd.s32 1, %s738_s16 }
   0xc   : > { %s32_s28 = sor.u32 %s31_s25, %s30_s27  ;;  %p629_p8 = scmp.ge.s32.totalorder %s758_s21, 4 }
   0xd   : > { %p33_p7 = scmp.eq.s32.totalorder %s32_s28, 0 }
   0xe   : > { %168 = sbr.rel (%p629_p8) target bundleno = 29 (0x1d), region = 28 }
   0xf   : > { %s842_s30 = scalar_select %p33_p7, %s738_s16, %s35_s29  }
  0x13   : > { %171 = sbr.rel (!%p44_p5) target bundleno = 29 (0x1d), region = 32  ;;  %s173_s5 = sand.u32 (%p44_p5), 1, %s738_s16  }
  0x14   : > { %s631_s6 = sshll.u32 (%p44_p5), %s754_s20, 3  ;;  %s630_s7 = sshll.u32 (%p44_p5), %s173_s5, 5 }
  0x15   : > { %s177_s8 = sadd.s32 (%p44_p5), %s750_s19, %s631_s6  ;;  %s175_s13 = scalar_lea.vmem (%p44_p5), [#allocation2], %s630_s7 }
  0x16   : > { %s632_s9 = sshll.u32 (%p44_p5), %s177_s8, 3 }
  0x17   : > { %s179_s12 = scalar_lea.vmem (%p44_p5), %s915_s0, %s632_s9 }
  0x18   : > { %v214_v0 = vld [vmem:[%s179_s12] sm:$0xff]  ;;  %v216_v1 = vld [vmem:[%s179_s12 + $0x10] sm:$0xff] }
  0x19   : > { %v218_v2 = vld [vmem:[%s179_s12 + $0x20] sm:$0xff]  ;;  %215 = vst [vmem:[%s175_s13] sm:$0xff] %v214_v0  ;;  %v220_v3 = vld [vmem:[%s179_s12 + $0x30] sm:$0xff] }
  0x1a   : > { %217 = vst [vmem:[%s175_s13 + $0x8] sm:$0xff] %v216_v1 }
  0x1b   : > { %219 = vst [vmem:[%s175_s13 + $0x10] sm:$0xff] %v218_v2 }
  0x1c   : > { %221 = vst [vmem:[%s175_s13 + $0x18] sm:$0xff] %v220_v3 }
  0x1d PF: > { %p633_p9 = scmp.ge.s32.totalorder %s758_s21, 1  ;;  %p226_p10 = scmp.lt.s32.totalorder %s758_s21, 5 }
  0x1f   : > { %p227_p11 = pnand %p633_p9, %p226_p10 }
  0x20   : > { %s233_s14 = sand.u32 (!%p227_p11), 1, %s734_s15  }
  0x21   : > { %230 = sbr.rel (%p227_p11) target bundleno = 250 (0xfa), region = 70  ;;  %s860_s29 = sshll.u32 (!%p227_p11), %s233_s14, 5 }
  0x22   : > { %s235_s5 = scalar_lea.vmem (!%p227_p11), [#allocation2], %s860_s29  ;;  %s256_s7 = scalar_lea.vmem (!%p227_p11), [#allocation3], %s860_s29 }
  0x26   : > { %v261_v4 = vld [vmem:[%s916_s1] sm:$0xff]  ;;  %vm268_vm0 = vcmask 261120   ;;  %v760_v7 = vmov 0   ;;  %v863_v9 = vld [vmem:[%s235_s5 + $0x18] sm:$0xff]  ;;  %v865_v10 = vld [vmem:[%s235_s5 + $0x10] sm:$0xff]  ;;  %s638_s8 = sshll.u32 (%p834_p6), %s746_s18, 3 }
  0x27   : > { %v262_v5 = vld [vmem:[%s917_s2] sm:$0xff]  ;;  %v270_v6 = vsel %vm268_vm0, %v261_v4, 0  ;;  %699 = vset.pattern.permute.xlu0 %v760_v7  ;;  %v867_v11 = vld [vmem:[%s235_s5 + $0x8] sm:$0xff]  ;;  %v284_v12 = vand.u32 4294901760, %v863_v9  ;;  %v286_v13 = vand.u32 4294901760, %v865_v10  ;;  %s506_s9 = sadd.s32 (%p834_p6), %s742_s17, %s638_s8 }
  0x28   : > { %v292_v8 = vand.u32 4294901760, %v270_v6  ;;  %265 = vperm.xlu0 %699, %v262_v5   ;;  %v288_v14 = vand.u32 4294901760, %v867_v11  ;;  %v872_v15 = vld [vmem:[%s235_s5] sm:$0xff]  ;;  %s639_s10 = sshll.u32 (%p834_p6), %s506_s9, 3 }
  0x29   : > { %v290_v17 = vand.u32 4294901760, %v872_v15  ;;  %v314_v18 = vsub.f32 %v863_v9, %v284_v12  ;;  %285 = vmatpush.msra.mxu0 %v284_v12  ;;  %v320_v19 = vsub.f32 %v865_v10, %v286_v13  ;;  %385 = vmatpush.msra.mxu3 %v284_v12  ;;  %v458_v27 = vld [vmem:[%s918_s3] sm:$0xff]  ;;  %s508_s13 = scalar_lea.vmem (%p834_p6), %s919_s4, %s639_s10 }
  0x2a   : > { %v293_v16 = vsub.f32 %v270_v6, %v292_v8  ;;  %v326_v20 = vsub.f32 %v867_v11, %v288_v14 }
  0x2b   : > { %v332_v22 = vsub.f32 %v872_v15, %v290_v17  ;;  %356 = vmatpush.msra.mxu2 %v314_v18  ;;  %287 = vmatpush.msra.mxu0 %v286_v13  ;;  %v315_v23 = vand.u32 4294901760, %v314_v18  ;;  %v321_v24 = vand.u32 4294901760, %v320_v19 }
  0x2c   : > { %v294_v21 = vand.u32 4294901760, %v293_v16  ;;  %v327_v25 = vand.u32 4294901760, %v326_v20  ;;  %387 = vmatpush.msra.mxu3 %v286_v13 }
  0x2d   : > { %v333_v28 = vand.u32 4294901760, %v332_v22  ;;  %359 = vmatpush.msra.mxu2 %v320_v19  ;;  %v316_v29 = vsub.f32 %v314_v18, %v315_v23  ;;  %289 = vmatpush.msra.mxu0 %v288_v14  ;;  %v322_v30 = vsub.f32 %v320_v19, %v321_v24 }
  0x2e   : > { %v295_v26 = vsub.f32 %v293_v16, %v294_v21  ;;  %v328_v31 = vsub.f32 %v326_v20, %v327_v25  ;;  %389 = vmatpush.msra.mxu3 %v288_v14 }
  0x2f   : > { %v317_v33 = vand.u32 4294901760, %v316_v29  ;;  %362 = vmatpush.msra.mxu2 %v326_v20  ;;  %v323_v34 = vand.u32 4294901760, %v322_v30  ;;  %291 = vmatpush.msra.mxu0 %v290_v17  ;;  %v334_v35 = vsub.f32 %v332_v22, %v333_v28 }
  0x30   : > { %v296_v32 = vand.u32 4294901760, %v295_v26  ;;  %461 = vperm.xlu0 %699, %v458_v27   ;;  %391 = vmatpush.msra.mxu3 %v290_v17  ;;  %v329_v36 = vand.u32 4294901760, %v328_v31 }
  0x31   : > { %318 = vmatpush.msra.mxu1 %v317_v33  ;;  %365 = vmatpush.msra.mxu2 %v332_v22  ;;  %v335_v37 = vand.u32 4294901760, %v334_v35 }
  0x32   : > { %297 = vmatmul.f32.vlgmr.msra.gmra.mxu0 %v296_v32  ;;  %368 = vmatmul.f32.vlgmr.msra.gmra.mxu2 %v293_v16 }
  0x33   : > { %395 = vmatmul.f32.vlgmr.msra.gmra.mxu3 %v294_v21  ;;  %324 = vmatpush.msra.mxu1 %v323_v34 }
  0x34   : > { %414 = vmatpush.msrb.mxu0 %v315_v23 }
  0x35   : > { %330 = vmatpush.msra.mxu1 %v329_v36 }
  0x36   : > { %418 = vmatpush.msrb.mxu0 %v321_v24 }
  0x37   : > { %336 = vmatpush.msra.mxu1 %v335_v37 }
  0x38   : > { %422 = vmatpush.msrb.mxu0 %v327_v25  ;;  %338 = vmatmul.f32.vlgmr.msra.gmra.mxu1 %v292_v8 }
  0x39   : > { %445 = vmatpush.msrb.mxu1 %v284_v12 }
  0x3a   : > { %426 = vmatpush.msrb.mxu0 %v333_v28 }
  0x3b   : > { %428 = vmatmul.f32.vlgmr.msrb.gmra.mxu0 %v292_v8  ;;  %447 = vmatpush.msrb.mxu1 %v286_v13 }
  0x3d   : > { %449 = vmatpush.msrb.mxu1 %v288_v14 }
  0x3f   : > { %451 = vmatpush.msrb.mxu1 %v290_v17 }
  0x40   : > { %453 = vmatmul.f32.vlgmr.msrb.gmra.mxu1 %v292_v8 }
  0x9a   : > { %v266_v39 = vpop.permute.xlu0 %265 }
  0xa2   : > { %v462_v52 = vpop.permute.xlu0 %461 }
  0xaf   : > { %v298_v38 = vpop.f32.mrf.mxu0 }
  0xb0   : > { %v299_v40 = vadd.f32 %v298_v38, %v266_v39 }
  0xb5   : > { %v339_v41 = vpop.f32.mrf.mxu1  ;;  %v369_v42 = vpop.f32.mrf.mxu2 }
  0xb6   : > { %v340_v43 = vadd.f32 %v339_v41, %v299_v40  ;;  %v396_v44 = vpop.f32.mrf.mxu3 }
  0xb8   : > { %v370_v45 = vadd.f32 %v369_v42, %v340_v43  ;;  %v429_v46 = vpop.f32.mrf.mxu0 }
  0xba   : > { %v397_v47 = vadd.f32 %v396_v44, %v370_v45 }
  0xbc   : > { %v430_v48 = vadd.f32 %v429_v46, %v397_v47 }
  0xbd   : > { %v454_v49 = vpop.f32.mrf.mxu1 }
  0xbe   : > { %v455_v50 = vadd.f32 %v454_v49, %v430_v48 }
  0xc0   : > { %v457_v51 = vmax.f32 %v455_v50, 0.0 }
  0xc2   : > { %v464_v53 = vmul.f32 %v462_v52, %v457_v51 }
  0xc4   : > { %v465_v54 = vrot.slane %v464_v53, 4 }
  0xc6   : > { %v466_v55 = vadd.f32 %v465_v54, %v464_v53 }
  0xc8   : > { %v467_v56 = vrot.slane %v466_v55, 2 }
  0xca   : > { %v468_v57 = vadd.f32 %v467_v56, %v466_v55 }
  0xcc   : > { %v469_v58 = vrot.slane %v468_v57, 1 }
  0xce   : > { %v470_v59 = vadd.f32 %v469_v58, %v468_v57 }
  0xd0   : > { %v636_v60 = vmul.f32 -1.442695, %v470_v59 }
  0xd2   : > { %700 = vpow2.f32 %v636_v60 }
  0xd8   : > { %v701_v61 = vpop.eup %700 }
  0xd9   : > { %v474_v62 = vadd.f32 1.0, %v701_v61 }
  0xdb   : > { %702 = vrcp.f32 %v474_v62  ;;  %v486_v2 = vand.u32 2147483648, %v474_v62  ;;  %v484_v4 = vand.u32 2147483647, %v474_v62  ;;  %vm480_vm2 = vweird.f32 %v474_v62 }
  0xdd   : > { %v487_v6 = vor.u32 1.1754944e-38, %v486_v2  ;;  %vm485_vm4 = vcmp.eq.f32.partialorder %v484_v4, 8.507059e+37 }
  0xe1   : > { %v703_v63 = vpop.eup %702 }
  0xe2   : > { %v476_v0 = vmul.f32 %v703_v63, %v474_v62  ;;  %vm481_vm1 = vweird.f32 %v703_v63 }
  0xe3   : > { %vm482_vm3 = vmor %vm480_vm2, %vm481_vm1 }
  0xe4   : > { %v477_v1 = vsub.f32 1.0, %v476_v0 }
  0xe6   : > { %v478_v3 = vmul.f32 %v703_v63, %v477_v1 }
  0xe8   : > { %v479_v5 = vadd.f32 %v703_v63, %v478_v3 }
  0xea   : > { %v483_v7 = vsel %vm482_vm3, %v703_v63, %v479_v5 }
  0xeb   : > { %v488_v8 = vsel %vm485_vm4, %v487_v6, %v483_v7 }
  0xec   : > { %v490_v12 = vmul.f32 %v488_v8, %v872_v15  ;;  %v491_v13 = vmul.f32 %v488_v8, %v867_v11  ;;  %v492_v14 = vmul.f32 %v488_v8, %v865_v10  ;;  %v493_v16 = vmul.f32 %v488_v8, %v863_v9 }
  0xed   : > { %504 = sbr.rel (!%p834_p6) target bundleno = 250 (0xfa), region = 78 }
  0xee   : > { %494 = vst [vmem:[%s256_s7] sm:$0xff] %v490_v12 }
  0xef   : > { %495 = vst [vmem:[%s256_s7 + $0x8] sm:$0xff] %v491_v13 }
  0xf0   : > { %496 = vst [vmem:[%s256_s7 + $0x10] sm:$0xff] %v492_v14 }
  0xf1   : > { %497 = vst [vmem:[%s256_s7 + $0x18] sm:$0xff] %v493_v16 }
  0xf5   : > { %v543_v17 = vld [vmem:[%s256_s7] sm:$0xff] }
  0xf6   : > { %v545_v15 = vld [vmem:[%s256_s7 + $0x8] sm:$0xff]  ;;  %544 = vst [vmem:[%s508_s13] sm:$0xff] %v543_v17 }
  0xf7   : > { %v547_v9 = vld [vmem:[%s256_s7 + $0x10] sm:$0xff]  ;;  %546 = vst [vmem:[%s508_s13 + $0x10] sm:$0xff] %v545_v15 }
  0xf8   : > { %v549_v10 = vld [vmem:[%s256_s7 + $0x18] sm:$0xff]  ;;  %548 = vst [vmem:[%s508_s13 + $0x20] sm:$0xff] %v547_v9 }
  0xf9   : > { %550 = vst [vmem:[%s508_s13 + $0x30] sm:$0xff] %v549_v10 }
  0xfa PF: > { %s14_s21 = sadd.s32 1, %s758_s21   ;;  %s921_s15 = smov %s738_s16 }
  0xfb   : > { %p11_p12 = scmp.ge.s32.totalorder %s14_s21, 6   ;;  %s922_s16 = smov %s842_s30 }
  0xfc   : > { %s923_s17 = smov %s750_s19  ;;  %s924_s18 = smov %s754_s20 }
  0xfd   : > { %s925_s19 = smov %s928_s22  ;;  %s926_s20 = smov %s932_s23 }
  0xfe   :  { %13 = sbr.rel (!%p11_p12) target bundleno = 4 (0x4), region = 147 }

</bundles_post_ra>
